<compile_context>
chip_gen: v7x
topology: tpu7x:2x2x1
jax: 0.10.0
libtpu: 0.0.40
codegen_flags: <defaults>
</compile_context>

<pallas_src>
import functools

import jax
import jax.numpy as jnp
from jax import lax
from jax.experimental import pallas as pl
from jax.experimental.pallas import tpu as pltpu

LEAKY_SLOPE = 0.2
BN_EPS = 1e-5
LANE = 128
SUBLANE = 8
VMEM_LIMIT = 48 * 1024 * 1024  # fits scoped VMEM on v5e/v6e and physical on v7x


def _round_up(x, m):
    return ((x + m - 1) // m) * m


# --------------------------------------------------------------------------
# kernels
# --------------------------------------------------------------------------
def _conv_tile(x_ref, w_ref, *, stride, k_taps, q_taps, c_in, c_out, tl):
    """Conv for one (batch, column-tile) block.

    x_ref: (1, 1, stride*c_in, tl + q_taps - 1)  polyphase input window (+halo)
    w_ref: (k_taps, c_out, c_in)                 per-tap weight matrices
    returns (c_out, tl) float32 accumulated over the K taps on the MXU.
    """
    acc = jnp.zeros((c_out, tl), jnp.float32)
    for q in range(q_taps):          # static Python loops -> fully unrolled
        for r in range(stride):
            k = r + stride * q       # original tap index
            if k >= k_taps:
                continue
            # static slices: phase r rows, columns shifted by q (halo window)
            xr = x_ref[0, 0, r * c_in:(r + 1) * c_in, q:q + tl]   # (c_in, tl)
            acc = acc + jnp.dot(w_ref[k], xr,
                                preferred_element_type=jnp.float32)
    return acc


def _conv_stats_kernel(x_ref, w_ref, y_ref, sum_ref, sq_ref, sum_acc, sq_acc, *,
                       stride, k_taps, q_taps, c_in, c_out, tl, l_out):
    """Pass 1 (use_norm=True): conv tile + per-channel sum / sum-of-squares."""
    j = pl.program_id(1)

    acc = _conv_tile(x_ref, w_ref, stride=stride, k_taps=k_taps, q_taps=q_taps,
                     c_in=c_in, c_out=c_out, tl=tl)
    y_ref[0] = acc                                   # raw conv output (f32)

    # Mask padded output columns so they do not pollute the batch statistics
    # (they can read real samples at the tail of the signal).
    cols = lax.broadcasted_iota(jnp.int32, (c_out, tl), 1) + j * tl
    accm = jnp.where(cols < l_out, acc, 0.0)

    @pl.when(j == 0)
    def _init():
        sum_acc[...] = jnp.zeros_like(sum_acc)
        sq_acc[...] = jnp.zeros_like(sq_acc)

    sum_acc[...] += jnp.sum(accm, axis=1, keepdims=True)         # (c_out, 1)
    sq_acc[...] += jnp.sum(accm * accm, axis=1, keepdims=True)   # (c_out, 1)
    sum_ref[0] = sum_acc[...]
    sq_ref[0] = sq_acc[...]


def _conv_fused_kernel(x_ref, w_ref, *rest, stride, k_taps, q_taps, c_in, c_out,
                       tl, use_act, residual):
    """Single pass (use_norm=False): conv + optional residual + LeakyReLU."""
    if residual:
        res_ref, o_ref = rest
    else:
        (o_ref,) = rest

    acc = _conv_tile(x_ref, w_ref, stride=stride, k_taps=k_taps, q_taps=q_taps,
                     c_in=c_in, c_out=c_out, tl=tl)
    if residual:
        acc = acc + res_ref[0]
    if use_act:
        acc = jnp.maximum(acc, LEAKY_SLOPE * acc)    # LeakyReLU(0.2)
    o_ref[0] = acc.astype(o_ref.dtype)


def _bn_act_kernel(y_ref, scale_ref, shift_ref, *rest, use_act, residual):
    """Pass 2: per-channel FMA (folded BatchNorm) + residual + LeakyReLU."""
    if residual:
        res_ref, o_ref = rest
    else:
        (o_ref,) = rest

    y = y_ref[0] * scale_ref[...] + shift_ref[...]   # (C, TILE) * (C, 1) + (C, 1)
    if residual:
        y = y + res_ref[0]
    if use_act:
        y = jnp.maximum(y, LEAKY_SLOPE * y)
    o_ref[0] = y.astype(o_ref.dtype)


# --------------------------------------------------------------------------
# wrapper
# --------------------------------------------------------------------------
def conv1d_block(x, w, b, gamma, beta, *, stride, padding,
                 use_norm=True, use_act=True, residual=False, col_tile=512):
    """Forward pass of wav2mov Conv1dBlock.

    x: (N, C_in, L) f32, w: (C_out, C_in, K) f32.  Returns (N, C_out, L_out) f32.
    `b` is accepted for API parity but never used: the PyTorch module has a conv
    bias only when use_norm=True, and a per-channel constant added before
    BatchNorm is exactly cancelled by the mean subtraction.
    """
    del b
    N, C_in, L = x.shape
    C_out, C_in_w, K = w.shape
    assert C_in_w == C_in
    S = int(stride)
    L_out = (L + 2 * padding - K) // S + 1
    assert L_out > 0
    Q = -(-K // S)                        # taps per polyphase branch

    assert col_tile % LANE == 0
    TL = min(col_tile, _round_up(L_out, LANE))      # lane-dense column tile
    n_tiles = -(-L_out // TL)
    L_out_pad = n_tiles * TL
    C_in_pad = _round_up(C_in, SUBLANE)
    C_out_pad = _round_up(C_out, SUBLANE)

    # ---- glue (plain JAX): pad + polyphase decompose + per-tile halo windows.
    # Unlike im2col this keeps input HBM traffic at ~1x (not Kx): the K taps are
    # re-read from the same VMEM-resident window inside the kernel.
    L_ph = L_out_pad + Q - 1                        # columns per phase branch
    L_xp = S * L_ph
    right = max(L_xp - (L + padding), 0)
    xpad = jnp.pad(x, ((0, 0), (0, C_in_pad - C_in),
                       (padding, right)))[:, :, :L_xp]
    xph = xpad.reshape(N, C_in_pad, L_ph, S)        # [n,c,p,r] = xpad[n,c,S*p+r]
    xph = jnp.transpose(xph, (0, 3, 1, 2)).reshape(N, S * C_in_pad, L_ph)

    W_win = TL + Q - 1
    starts = jnp.arange(n_tiles) * TL
    xwin = jax.vmap(
        lambda s: lax.dynamic_slice_in_dim(xph, s, W_win, axis=2),
        out_axes=1)(starts)                         # (N, n_tiles, S*C_in_pad, W)
    xwin = xwin.astype(jnp.float32)

    wk = jnp.transpose(w, (2, 0, 1))                # (K, C_out, C_in)
    wk = jnp.pad(wk, ((0, 0), (0, C_out_pad - C_out),
                      (0, C_in_pad - C_in))).astype(jnp.float32)

    if residual:
        assert C_in == C_out and L_out == L, "residual requires matching shapes"
        res = jnp.pad(x, ((0, 0), (0, C_out_pad - C_out),
                          (0, L_out_pad - L))).astype(jnp.float32)

    grid = (N, n_tiles)
    x_spec = pl.BlockSpec((1, 1, S * C_in_pad, W_win), lambda n, j: (n, j, 0, 0))
    w_spec = pl.BlockSpec((K, C_out_pad, C_in_pad), lambda n, j: (0, 0, 0))
    tile_spec = pl.BlockSpec((1, C_out_pad, TL), lambda n, j: (n, 0, j))
    chan_spec = pl.BlockSpec((1, C_out_pad, 1), lambda n, j: (n, 0, 0))
    vec_spec = pl.BlockSpec((C_out_pad, 1), lambda n, j: (0, 0))

    conv_cost = pl.CostEstimate(
        flops=2 * N * L_out_pad * C_out_pad * C_in_pad * K,
        transcendentals=0,
        bytes_accessed=int(4 * (xwin.size + wk.size
                                + N * C_out_pad * L_out_pad
                                + 2 * N * C_out_pad)))

    conv_static = dict(stride=S, k_taps=K, q_taps=Q,
                       c_in=C_in_pad, c_out=C_out_pad, tl=TL)

    if use_norm:
        # ---- pass 1: conv + per-channel sum / sum-of-squares -----------------
        yconv, csum, csq = pl.pallas_call(
            functools.partial(_conv_stats_kernel, l_out=L_out, **conv_static),
            grid=grid,
            in_specs=[x_spec, w_spec],
            out_specs=[tile_spec, chan_spec, chan_spec],
            out_shape=[
                jax.ShapeDtypeStruct((N, C_out_pad, L_out_pad), jnp.float32),
                jax.ShapeDtypeStruct((N, C_out_pad, 1), jnp.float32),
                jax.ShapeDtypeStruct((N, C_out_pad, 1), jnp.float32),
            ],
            scratch_shapes=[pltpu.VMEM((C_out_pad, 1), jnp.float32),
                            pltpu.VMEM((C_out_pad, 1), jnp.float32)],
            compiler_params=pltpu.CompilerParams(
                dimension_semantics=("parallel", "arbitrary"),
                vmem_limit_bytes=VMEM_LIMIT),
            cost_estimate=conv_cost,
        )(xwin, wk)

        # ---- tiny per-channel reduction -> folded scale/shift (plain JAX) ----
        cnt = N * L_out
        tsum = jnp.sum(csum[:, :C_out, 0], axis=0)
        tsq = jnp.sum(csq[:, :C_out, 0], axis=0)
        mean = tsum / cnt
        var = jnp.maximum(tsq / cnt - mean * mean, 0.0)   # biased, training-mode BN
        scale = gamma * lax.rsqrt(var + BN_EPS)
        shift = beta - mean * scale
        scale2 = jnp.pad(scale, (0, C_out_pad - C_out)).reshape(C_out_pad, 1)
        shift2 = jnp.pad(shift, (0, C_out_pad - C_out)).reshape(C_out_pad, 1)

        inputs = [yconv, scale2.astype(jnp.float32), shift2.astype(jnp.float32)]
        in_specs = [tile_spec, vec_spec, vec_spec]
        if residual:
            inputs.append(res)
            in_specs.append(tile_spec)

        # ---- pass 2: normalize (one FMA) + residual + LeakyReLU --------------
        out_pad = pl.pallas_call(
            functools.partial(_bn_act_kernel, use_act=use_act, residual=residual),
            grid=grid,
            in_specs=in_specs,
            out_specs=tile_spec,
            out_shape=jax.ShapeDtypeStruct((N, C_out_pad, L_out_pad), jnp.float32),
            compiler_params=pltpu.CompilerParams(
                dimension_semantics=("parallel", "parallel"),
                vmem_limit_bytes=VMEM_LIMIT),
        )(*inputs)
    else:
        # ---- single fused pass: conv + residual + LeakyReLU ------------------
        inputs = [xwin, wk]
        in_specs = [x_spec, w_spec]
        if residual:
            inputs.append(res)
            in_specs.append(tile_spec)

        out_pad = pl.pallas_call(
            functools.partial(_conv_fused_kernel, use_act=use_act,
                              residual=residual, **conv_static),
            grid=grid,
            in_specs=in_specs,
            out_specs=tile_spec,
            out_shape=jax.ShapeDtypeStruct((N, C_out_pad, L_out_pad), jnp.float32),
            compiler_params=pltpu.CompilerParams(
                dimension_semantics=("parallel", "parallel"),
                vmem_limit_bytes=VMEM_LIMIT),
            cost_estimate=conv_cost,
        )(*inputs)

    return out_pad[:, :C_out, :L_out]


# --------------------------------------------------------------------------
# pure-JAX reference (mirrors the PyTorch module, training-mode BatchNorm)
# --------------------------------------------------------------------------
def conv1d_block_ref(x, w, b, gamma, beta, *, stride, padding,
                     use_norm=True, use_act=True, residual=False):
    y = lax.conv_general_dilated(
        x, w, window_strides=(stride,), padding=[(padding, padding)],
        dimension_numbers=('NCH', 'OIH', 'NCH'))
    if use_norm:
        y = y + b[None, :, None]
        mean = y.mean(axis=(0, 2), keepdims=True)
        var = ((y - mean) ** 2).mean(axis=(0, 2), keepdims=True)
        y = (y - mean) / jnp.sqrt(var + BN_EPS)
        y = y * gamma[None, :, None] + beta[None, :, None]
    if residual:
        y = y + x
    if use_act:
        y = jnp.where(y > 0, y, LEAKY_SLOPE * y)
    return y


# --------------------------------------------------------------------------
if __name__ == "__main__":
    key = jax.random.PRNGKey(0)

    def run_case(name, key, *, N, C_in, C_out, L, K, stride, padding,
                 use_norm, use_act, residual):
        kx, kw, kb, kg, kbe = jax.random.split(key, 5)
        x = jax.random.normal(kx, (N, C_in, L), dtype=jnp.float32)
        w = jax.random.normal(kw, (C_out, C_in, K), dtype=jnp.float32) * 0.3
        b = jax.random.normal(kb, (C_out,), dtype=jnp.float32) * 0.1
        gamma = 1.0 + 0.1 * jax.random.normal(kg, (C_out,), dtype=jnp.float32)
        beta = 0.1 * jax.random.normal(kbe, (C_out,), dtype=jnp.float32)

        out = conv1d_block(x, w, b, gamma, beta, stride=stride, padding=padding,
                           use_norm=use_norm, use_act=use_act, residual=residual)
        out = jax.block_until_ready(out)

        ref = conv1d_block_ref(x, w, b, gamma, beta, stride=stride,
                               padding=padding, use_norm=use_norm,
                               use_act=use_act, residual=residual)
        L_out = (L + 2 * padding - K) // stride + 1
        assert out.shape == (N, C_out, L_out), (name, out.shape)
        assert jnp.allclose(out, ref, atol=1e-3, rtol=1e-3), \
            f"{name}: mismatch vs JAX reference"

    k1, k2, k3 = jax.random.split(key, 3)
    run_case("norm_act", k1, N=2, C_in=4, C_out=8, L=16, K=3, stride=1,
             padding=1, use_norm=True, use_act=True, residual=False)
    run_case("strided", k2, N=2, C_in=4, C_out=8, L=16, K=4, stride=2,
             padding=1, use_norm=True, use_act=True, residual=False)
    run_case("residual_no_norm", k3, N=2, C_in=8, C_out=8, L=16, K=3, stride=1,
             padding=1, use_norm=False, use_act=True, residual=True)

    print("KERNEL_OK")
</pallas_src>

<mosaic_0001>
module attributes {stable_mosaic.version = 11 : i64} {
  func.func @_conv_stats_kernel(%arg0: i32, %arg1: i32, %arg2: memref<1x1x8x130xf32, #tpu.memory_space<vmem>>, %arg3: memref<3x8x8xf32, #tpu.memory_space<vmem>>, %arg4: memref<1x8x128xf32, #tpu.memory_space<vmem>>, %arg5: memref<1x8x1xf32, #tpu.memory_space<vmem>>, %arg6: memref<1x8x1xf32, #tpu.memory_space<vmem>>, %arg7: memref<8x1xf32, #tpu.memory_space<vmem>>, %arg8: memref<8x1xf32, #tpu.memory_space<vmem>>) attributes {dimension_semantics = [#tpu.dimension_semantics<parallel>, #tpu.dimension_semantics<arbitrary>], iteration_bounds = array<i64: 2, 1>, scalar_prefetch = 0 : i64, scratch_operands = 2 : i64, tpu.core_type = #tpu.core_type<tc>, window_params = [{transform_indices = @transform_0, window_bounds = array<i64: 1, 1, 8, 130>}, {pipeline_mode = #tpu.pipeline_mode<synchronous>, transform_indices = @transform_1, window_bounds = array<i64: 3, 8, 8>}, {transform_indices = @transform_2, window_bounds = array<i64: 1, 8, 128>}, {transform_indices = @transform_3, window_bounds = array<i64: 1, 8, 1>}, {transform_indices = @transform_4, window_bounds = array<i64: 1, 8, 1>}]} {
    %cst = arith.constant 0.000000e+00 : f32
    %0 = vector.broadcast %cst : f32 to vector<8x128xf32>
    %c0 = arith.constant 0 : index
    %c0_0 = arith.constant 0 : index
    %c0_1 = arith.constant 0 : index
    %c0_2 = arith.constant 0 : index
    %1 = vector.load %arg2[%c0, %c0_0, %c0_1, %c0_2] : memref<1x1x8x130xf32, #tpu.memory_space<vmem>>, vector<1x1x8x128xf32>
    %2 = vector.shape_cast %1 : vector<1x1x8x128xf32> to vector<8x128xf32>
    %c0_3 = arith.constant 0 : index
    %c0_4 = arith.constant 0 : index
    %c0_5 = arith.constant 0 : index
    %3 = vector.load %arg3[%c0_3, %c0_4, %c0_5] : memref<3x8x8xf32, #tpu.memory_space<vmem>>, vector<1x8x8xf32>
    %4 = vector.shape_cast %3 : vector<1x8x8xf32> to vector<8x8xf32>
    %cst_6 = arith.constant dense<0.000000e+00> : vector<8x128xf32>
    %5 = tpu.matmul %4, %2, %cst_6 {dimension_numbers = #tpu.dot_dimension_numbers<[1], [0], [0], [1], [0, 0, 1, 1], [], []>} : vector<8x8xf32>, vector<8x128xf32>, vector<8x128xf32> -> vector<8x128xf32>
    %6 = arith.addf %0, %5 : vector<8x128xf32>
    %c0_7 = arith.constant 0 : index
    %c0_8 = arith.constant 0 : index
    %c0_9 = arith.constant 0 : index
    %c1 = arith.constant 1 : index
    %7 = vector.load %arg2[%c0_7, %c0_8, %c0_9, %c1] : memref<1x1x8x130xf32, #tpu.memory_space<vmem>>, vector<1x1x8x128xf32>
    %8 = vector.shape_cast %7 : vector<1x1x8x128xf32> to vector<8x128xf32>
    %c1_10 = arith.constant 1 : index
    %c0_11 = arith.constant 0 : index
    %c0_12 = arith.constant 0 : index
    %9 = vector.load %arg3[%c1_10, %c0_11, %c0_12] : memref<3x8x8xf32, #tpu.memory_space<vmem>>, vector<1x8x8xf32>
    %10 = vector.shape_cast %9 : vector<1x8x8xf32> to vector<8x8xf32>
    %cst_13 = arith.constant dense<0.000000e+00> : vector<8x128xf32>
    %11 = tpu.matmul %10, %8, %cst_13 {dimension_numbers = #tpu.dot_dimension_numbers<[1], [0], [0], [1], [0, 0, 1, 1], [], []>} : vector<8x8xf32>, vector<8x128xf32>, vector<8x128xf32> -> vector<8x128xf32>
    %12 = arith.addf %6, %11 : vector<8x128xf32>
    %c0_14 = arith.constant 0 : index
    %c0_15 = arith.constant 0 : index
    %c0_16 = arith.constant 0 : index
    %c2 = arith.constant 2 : index
    %13 = vector.load %arg2[%c0_14, %c0_15, %c0_16, %c2] : memref<1x1x8x130xf32, #tpu.memory_space<vmem>>, vector<1x1x8x128xf32>
    %14 = vector.shape_cast %13 : vector<1x1x8x128xf32> to vector<8x128xf32>
    %c2_17 = arith.constant 2 : index
    %c0_18 = arith.constant 0 : index
    %c0_19 = arith.constant 0 : index
    %15 = vector.load %arg3[%c2_17, %c0_18, %c0_19] : memref<3x8x8xf32, #tpu.memory_space<vmem>>, vector<1x8x8xf32>
    %16 = vector.shape_cast %15 : vector<1x8x8xf32> to vector<8x8xf32>
    %cst_20 = arith.constant dense<0.000000e+00> : vector<8x128xf32>
    %17 = tpu.matmul %16, %14, %cst_20 {dimension_numbers = #tpu.dot_dimension_numbers<[1], [0], [0], [1], [0, 0, 1, 1], [], []>} : vector<8x8xf32>, vector<8x128xf32>, vector<8x128xf32> -> vector<8x128xf32>
    %18 = arith.addf %12, %17 : vector<8x128xf32>
    %c0_21 = arith.constant 0 : index
    %c0_22 = arith.constant 0 : index
    %c0_23 = arith.constant 0 : index
    %19 = vector.load %arg4[%c0_21, %c0_22, %c0_23] : memref<1x8x128xf32, #tpu.memory_space<vmem>>, vector<1x8x128xf32>
    %20 = vector.shape_cast %19 : vector<1x8x128xf32> to vector<8x128xf32>
    %21 = vector.shape_cast %18 : vector<8x128xf32> to vector<1x8x128xf32>
    tpu.vector_store %arg4[%c0_21, %c0_22, %c0_23], %21 {strides = array<i32>} : memref<1x8x128xf32, #tpu.memory_space<vmem>>, vector<1x8x128xf32>,
    %22 = tpu.iota {dimensions = array<i32: 1>} : vector<8x128xi32>
    %c128_i32 = arith.constant 128 : i32
    %23 = arith.muli %arg1, %c128_i32 : i32
    %24 = vector.broadcast %23 : i32 to vector<8x128xi32>
    %25 = arith.addi %22, %24 : vector<8x128xi32>
    %c16_i32 = arith.constant 16 : i32
    %26 = vector.broadcast %c16_i32 : i32 to vector<8x128xi32>
    %27 = arith.cmpi slt, %25, %26 : vector<8x128xi32>
    %cst_24 = arith.constant 0.000000e+00 : f32
    %28 = vector.broadcast %cst_24 : f32 to vector<8x128xf32>
    %29 = arith.select %27, %18, %28 : vector<8x128xi1>, vector<8x128xf32>
    %c0_i32 = arith.constant 0 : i32
    %30 = arith.cmpi eq, %arg1, %c0_i32 : i32
    %31 = arith.extui %30 : i1 to i32
    %c0_i32_25 = arith.constant 0 : i32
    %32 = arith.cmpi ne, %31, %c0_i32_25 : i32
    scf.if %32 {
      %cst_46 = arith.constant 0.000000e+00 : f32
      %52 = vector.broadcast %cst_46 : f32 to vector<8x1xf32>
      %c0_47 = arith.constant 0 : index
      %c0_48 = arith.constant 0 : index
      %53 = vector.load %arg7[%c0_47, %c0_48] : memref<8x1xf32, #tpu.memory_space<vmem>>, vector<8x1xf32>
      tpu.vector_store %arg7[%c0_47, %c0_48], %52 {strides = array<i32>} : memref<8x1xf32, #tpu.memory_space<vmem>>, vector<8x1xf32>,
      %cst_49 = arith.constant 0.000000e+00 : f32
      %54 = vector.broadcast %cst_49 : f32 to vector<8x1xf32>
      %c0_50 = arith.constant 0 : index
      %c0_51 = arith.constant 0 : index
      %55 = vector.load %arg8[%c0_50, %c0_51] : memref<8x1xf32, #tpu.memory_space<vmem>>, vector<8x1xf32>
      tpu.vector_store %arg8[%c0_50, %c0_51], %54 {strides = array<i32>} : memref<8x1xf32, #tpu.memory_space<vmem>>, vector<8x1xf32>,
    } else {
    }
    %c0_26 = arith.constant 0 : index
    %c0_27 = arith.constant 0 : index
    %33 = vector.load %arg7[%c0_26, %c0_27] : memref<8x1xf32, #tpu.memory_space<vmem>>, vector<8x1xf32>
    %cst_28 = arith.constant dense<0.000000e+00> : vector<8xf32>
    %34 = vector.multi_reduction <add>, %29, %cst_28 [1] : vector<8x128xf32> to vector<8xf32>
    %35 = vector.shape_cast %34 : vector<8xf32> to vector<8x1xf32>
    %36 = arith.addf %33, %35 : vector<8x1xf32>
    %c0_29 = arith.constant 0 : index
    %c0_30 = arith.constant 0 : index
    %37 = vector.load %arg7[%c0_29, %c0_30] : memref<8x1xf32, #tpu.memory_space<vmem>>, vector<8x1xf32>
    tpu.vector_store %arg7[%c0_29, %c0_30], %36 {strides = array<i32>} : memref<8x1xf32, #tpu.memory_space<vmem>>, vector<8x1xf32>,
    %c0_31 = arith.constant 0 : index
    %c0_32 = arith.constant 0 : index
    %38 = vector.load %arg8[%c0_31, %c0_32] : memref<8x1xf32, #tpu.memory_space<vmem>>, vector<8x1xf32>
    %39 = arith.mulf %29, %29 : vector<8x128xf32>
    %cst_33 = arith.constant dense<0.000000e+00> : vector<8xf32>
    %40 = vector.multi_reduction <add>, %39, %cst_33 [1] : vector<8x128xf32> to vector<8xf32>
    %41 = vector.shape_cast %40 : vector<8xf32> to vector<8x1xf32>
    %42 = arith.addf %38, %41 : vector<8x1xf32>
    %c0_34 = arith.constant 0 : index
    %c0_35 = arith.constant 0 : index
    %43 = vector.load %arg8[%c0_34, %c0_35] : memref<8x1xf32, #tpu.memory_space<vmem>>, vector<8x1xf32>
    tpu.vector_store %arg8[%c0_34, %c0_35], %42 {strides = array<i32>} : memref<8x1xf32, #tpu.memory_space<vmem>>, vector<8x1xf32>,
    %c0_36 = arith.constant 0 : index
    %c0_37 = arith.constant 0 : index
    %44 = vector.load %arg7[%c0_36, %c0_37] : memref<8x1xf32, #tpu.memory_space<vmem>>, vector<8x1xf32>
    %c0_38 = arith.constant 0 : index
    %c0_39 = arith.constant 0 : index
    %c0_40 = arith.constant 0 : index
    %45 = vector.load %arg5[%c0_38, %c0_39, %c0_40] : memref<1x8x1xf32, #tpu.memory_space<vmem>>, vector<1x8x1xf32>
    %46 = vector.shape_cast %45 : vector<1x8x1xf32> to vector<8x1xf32>
    %47 = vector.shape_cast %44 : vector<8x1xf32> to vector<1x8x1xf32>
    tpu.vector_store %arg5[%c0_38, %c0_39, %c0_40], %47 {strides = array<i32>} : memref<1x8x1xf32, #tpu.memory_space<vmem>>, vector<1x8x1xf32>,
    %c0_41 = arith.constant 0 : index
    %c0_42 = arith.constant 0 : index
    %48 = vector.load %arg8[%c0_41, %c0_42] : memref<8x1xf32, #tpu.memory_space<vmem>>, vector<8x1xf32>
    %c0_43 = arith.constant 0 : index
    %c0_44 = arith.constant 0 : index
    %c0_45 = arith.constant 0 : index
    %49 = vector.load %arg6[%c0_43, %c0_44, %c0_45] : memref<1x8x1xf32, #tpu.memory_space<vmem>>, vector<1x8x1xf32>
    %50 = vector.shape_cast %49 : vector<1x8x1xf32> to vector<8x1xf32>
    %51 = vector.shape_cast %48 : vector<8x1xf32> to vector<1x8x1xf32>
    tpu.vector_store %arg6[%c0_43, %c0_44, %c0_45], %51 {strides = array<i32>} : memref<1x8x1xf32, #tpu.memory_space<vmem>>, vector<1x8x1xf32>,
    return
  }
  func.func @transform_0(%arg0: i32, %arg1: i32) -> (i32, i32, i32, i32) {
    %c0_i32 = arith.constant 0 : i32
    %c0_i32_0 = arith.constant 0 : i32
    %c0_i32_1 = arith.constant 0 : i32
    return %arg0, %arg1, %c0_i32, %c0_i32_0 : i32, i32, i32, i32
  }
  func.func @transform_1(%arg0: i32, %arg1: i32) -> (i32, i32, i32) {
    %c0_i32 = arith.constant 0 : i32
    %c0_i32_0 = arith.constant 0 : i32
    %c0_i32_1 = arith.constant 0 : i32
    %c0_i32_2 = arith.constant 0 : i32
    return %c0_i32, %c0_i32_0, %c0_i32_1 : i32, i32, i32
  }
  func.func @transform_2(%arg0: i32, %arg1: i32) -> (i32, i32, i32) {
    %c0_i32 = arith.constant 0 : i32
    %c0_i32_0 = arith.constant 0 : i32
    return %arg0, %c0_i32, %arg1 : i32, i32, i32
  }
  func.func @transform_3(%arg0: i32, %arg1: i32) -> (i32, i32, i32) {
    %c0_i32 = arith.constant 0 : i32
    %c0_i32_0 = arith.constant 0 : i32
    %c0_i32_1 = arith.constant 0 : i32
    return %arg0, %c0_i32, %c0_i32_0 : i32, i32, i32
  }
  func.func @transform_4(%arg0: i32, %arg1: i32) -> (i32, i32, i32) {
    %c0_i32 = arith.constant 0 : i32
    %c0_i32_0 = arith.constant 0 : i32
    %c0_i32_1 = arith.constant 0 : i32
    return %arg0, %c0_i32, %c0_i32_0 : i32, i32, i32
  }
}

</mosaic_0001>

<bundles_post_ra>
// kernel: tpu_custom_call.1
= control target key start
LH: loop header
LB: loop body
LE: loop exit
PB: predicated region body
PF: predicated region fallthrough
CT: control target
= control target key end

     0   :  { %10 = vsyncpa [#allocation5], 0  ;;  %s1243_s0 = inlined_call_operand.hbm [shape: f32[2,1,8,130], index: 0, kind: input, shape index: {}]   ;;  %s1244_s1 = inlined_call_operand.hbm [shape: f32[3,8,8], index: 1, kind: input, shape index: {}]   ;;  %s1245_s2 = inlined_call_operand.hbm [shape: f32[2,8,128], index: 2, kind: output, shape index: {0}]   ;;  %s1246_s3 = inlined_call_operand.vmem [shape: f32[2,8,1], index: 3, kind: output, shape index: {1}]   ;;  %s1247_s4 = inlined_call_operand.vmem [shape: f32[2,8,1], index: 4, kind: output, shape index: {2}]  }
   0x1   :  { %12 = vsyncpa [#allocation5 + $0x1], 0 }
   0x2   :  { %13 = vsyncpa [#allocation8], 0 }
   0x3   :  { %14 = vsyncpa [#allocation6], 0 }
   0x4   :  { %16 = vsyncpa [#allocation6 + $0x1], 0  ;;  %s1017_s15 = smov 0   ;;  %s1019_s16 = smov 0  }
   0x5   :  { %s1021_s17 = smov 0   ;;  %s1023_s18 = smov 0  }
   0x6   :  { %s1025_s19 = smov 0   ;;  %s1027_s20 = smov 0  }
   0x7 LB: > { %s712_s21 = sadd.s32 4294967295, %s981_s20   ;;  %s713_s22 = sadd.s32 4294967294, %s981_s20   ;;  %s981_s20 = sphi %s1027_s20, %s22_s20   ;;  %s977_s19 = sphi %s1025_s19, %s1271_s19   ;;  %s973_s18 = sphi %s1023_s18, %s1270_s18   ;;  %s969_s17 = sphi %s1021_s17, %s1269_s17   ;;  %s965_s16 = sphi %s1019_s16, %s1268_s16   ;;  %s961_s15 = sphi %s1017_s15, %s1267_s15  }
   0x8   : > { %p56_p0 = scmp.ne.s32.totalorder %s965_s16, %s961_s15  ;;  %p1051_p1 = scmp.eq.s32.totalorder %s712_s21, 0 }
   0x9   : > { %p1055_p2 = scmp.eq.s32.totalorder %s712_s21, 1  ;;  %p109_p3 = scmp.eq.s32.totalorder %s713_s22, 1 }
   0xa   : > { %s1252_s23 = scalar_select %p1051_p1, 1, 0 }
   0xb   : > { %s1253_s24 = scalar_select %p1055_p2, 1, 0 }
   0xc   : > { %p1061_p4 = por %p1051_p1, %p56_p0  ;;  %p714_p5 = scmp.ge.s32.totalorder %s981_s20, 1 }
   0xd   : > { %p1066_p6 = por %p109_p3, %p56_p0  ;;  %p168_p7 = scmp.lt.s32.totalorder %s981_s20, 3 }
   0xe   : > { %s1254_s25 = scalar_select %p1061_p4, 1, 0 }
   0xf   : > { %s1255_s26 = scalar_select %p1066_p6, 1, 0 }
  0x10   : > { %p1071_p8 = pnand %p714_p5, %p168_p7  ;;  %s983_s28 = smov [#allocation7]  }
  0x11   : > { %s180_s29 = sshll.u32 %s983_s28, 4  ;;  %s34_s5 = sadd.s32 1, %s977_s19  ;;  %s181_s29 = int_to_ptr.vmem [resolvable:$true] %s180_s29 }
  0x12   : > { %s1256_s27 = scalar_select %p1071_p8, 1, 0 }
  0x13   : > { %p766_p9 = pneg %p1071_p8  ;;  %s837_s8 = scalar_lea.hbm %s1244_s1, 384 }
  0x14   : > { %p838_p12 = scmp.ne.s32.totalorder %s1244_s1, %s837_s8  ;;  %p844_p5 = scmp.lt.u32.totalorder %s837_s8, %s1244_s1 }
  0x15   : > { %p1080_p11 = pnand %p766_p9, %p1051_p1 }
  0x17   : > { %p839_p13 = pneg %p1080_p11 }
  0x19   : > { %p840_p0 = pnand %p839_p13, %p838_p12 }
  0x1b   : > { %p841_p3 = pneg %p840_p0 }
  0x1d   : > { %p846_p7 = pnand %p844_p5, %p841_p3 }
  0x1f   : > { %849 = shalt.err (!%p846_p7)
}
  0x20   : > { %s850_s13 = scalar_lea.vmem %s181_s29, 384  ;;  %p858_p1 = scmp.lt.s32.totalorder %s181_s29, %s181_s29 }
  0x21   : > { %p851_p9 = scmp.ne.s32.totalorder %s181_s29, %s850_s13  ;;  %p859_p4 = scmp.lt.s32.totalorder %s850_s13, %s850_s13 }
  0x23   : > { %p853_p10 = pnand %p851_p9, %p839_p13  ;;  %p860_p8 = por %p859_p4, %p858_p1 }
  0x25   : > { %p854_p6 = pneg %p853_p10 }
  0x27   : > { %p861_p2 = pnand %p860_p8, %p854_p6 }
  0x29   : > { %864 = shalt.err (!%p861_p2)
}
  0x2a   : > { %s984_s14 = smov 128   ;;  %s985_s21 = smov 8  }
  0x2b   : > { %769 = dma.hbm_to_vmem [thread:$0]  (!%p1080_p11), %s1244_s1, 384, %s181_s29, [#allocation8], %s984_s14, %s984_s14, %s985_s21  }
  0x2c   : > { %p36_p1 = scmp.ge.s32.totalorder %s34_s5, 2  ;;  %s43_s6 = sadd.s32 1, %s969_s17 }
  0x2d   : > { %p50_p2 = scmp.ne.s32.totalorder %s969_s17, %s965_s16  ;;  %p51_p4 = scmp.eq.s32.totalorder %s981_s20, 0 }
  0x2e   : > { %s1273_s5 = smov (%p36_p1, %s34_s5), 0  ;;  %p1259_p8 = scmp.ne.s32.totalorder %s1253_s24, 0 }
  0x2f   : > { %p1107_p6 = por %p51_p4, %p50_p2  ;;  %s38_s30 = ssub.s32 %s977_s19, %s1273_s5 }
  0x30   : > { %p1113_p10 = por %p1259_p8, %p50_p2  ;;  %p779_p12 = scmp.lt.s32.totalorder %s981_s20, 2 }
  0x31   : > { %p41_p11 = scmp.eq.s32.totalorder %s38_s30, 0  ;;  %s194_s29 = sand.u32 1, %s969_s17  }
  0x32   : > { %s717_s9 = sshll.u32 %s194_s29, 4  ;;  %s733_s11 = sshll.u32 %s977_s19, 8 }
  0x33   : > { %s1122_s10 = scalar_select %p41_p11, %s969_s17, %s43_s6  }
  0x34   : > { %s1128_s14 = scalar_lea.hbm %s1243_s0, %s733_s11  ;;  %s198_s24 = scalar_lea.vmem [#allocation4], %s717_s9 }
  0x35   : > { %s208_s21 = sshll.u32 %s198_s24, 4  ;;  %p1134_p13 = pnand %p779_p12, %p1107_p6  ;;  %s1130_s21 = int_to_ptr.vmem [resolvable:$true] %s208_s21 }
  0x36   : > { %s195_s28 = scalar_lea.sflag [#allocation5], %s194_s29  ;;  %s865_s6 = scalar_lea.hbm %s1128_s14, 256 }
  0x37   : > { %p866_p0 = scmp.ne.s32.totalorder %s1128_s14, %s865_s6  ;;  %p867_p3 = pneg %p1134_p13 }
  0x38   : > { %s870_s11 = scalar_lea.hbm %s1243_s0, 512  ;;  %p871_p9 = scmp.lt.u32.totalorder %s1128_s14, %s1243_s0 }
  0x39   : > { %p868_p5 = pnand %p867_p3, %p866_p0  ;;  %p872_p1 = scmp.lt.u32.totalorder %s870_s11, %s865_s6 }
  0x3a   : > { %p874_p4 = scmp.lt.u32.totalorder %s865_s6, %s1128_s14 }
  0x3b   : > { %p869_p7 = pneg %p868_p5  ;;  %p873_p2 = por %p872_p1, %p871_p9 }
  0x3d   : > { %p875_p6 = por %p874_p4, %p873_p2 }
  0x3f   : > { %p876_p8 = pnand %p875_p6, %p869_p7 }
  0x41   : > { %879 = shalt.err (!%p876_p8)
}
  0x42   : > { %s880_s29 = scalar_lea.vmem %s1130_s21, 256  ;;  %s986_s13 = smov [#allocation4]  }
  0x43   : > { %p881_p12 = scmp.ne.s32.totalorder %s1130_s21, %s880_s29  ;;  %s885_s24 = sshll.u32 %s986_s13, 4  ;;  %s886_s24 = int_to_ptr.vmem [resolvable:$false] %s885_s24 }
  0x44   : > { %s887_s30 = scalar_lea.vmem %s886_s24, 512  ;;  %p888_p5 = scmp.lt.s32.totalorder %s1130_s21, %s886_s24 }
  0x45   : > { %p883_p11 = pnand %p881_p12, %p867_p3  ;;  %p889_p9 = scmp.lt.s32.totalorder %s887_s30, %s880_s29 }
  0x47   : > { %p884_p0 = pneg %p883_p11  ;;  %p890_p1 = por %p889_p9, %p888_p5 }
  0x49   : > { %p891_p2 = pnand %p890_p1, %p884_p0 }
  0x4b   : > { %894 = shalt.err (!%p891_p2)
}
  0x4c   : > { %773 = dma.hbm_to_vmem [thread:$0]  (!%p1134_p13), %s1128_s14, 256, %s1130_s21, %s195_s28  }
  0x4d   : > { %p1262_p7 = scmp.ne.s32.totalorder %s1256_s27, 0 }
  0x4e   : > { %s1166_s6 = sand.u32 (!%p1262_p7), 1, %s965_s16   ;;  %p1263_p3 = scmp.ne.s32.totalorder (!%p1262_p7), %s1254_s25, 0 }
  0x4f   : > { %217 = sbr.rel (%p1262_p7) target bundleno = 584 (0x248), region = 28  ;;  %s721_s9 = sshll.u32 (!%p1262_p7), %s1166_s6, 4 }
  0x50   : > { %s220_s11 = scalar_lea.sflag (!%p1262_p7), [#allocation5], %s1166_s6  ;;  %s223_s7 = scalar_lea.vmem (!%p1262_p7), [#allocation4], %s721_s9 }
  0x56   : > { %948 = dma.done.wait (%p1263_p3), %s220_s11, 256  }
  0x57   : > { %950 = vsyncadd (%p1263_p3), %s220_s11, 4294967040  ;;  %p1264_p4 = scmp.ne.s32.totalorder %s1252_s23, 0 }
  0x59   : > { %952 = dma.done.wait (%p1264_p4), [#allocation8], 384  }
  0x5a   : > { %954 = vsyncadd (%p1264_p4), [#allocation8], 4294966912  ;;  %v987_v0 = vmov 0.0   ;;  %vm988_vm0 = vmmov 0   ;;  %v268_v1 = vld [vmem:[%s223_s7] sm:$0xff]  ;;  %vm282_vm1 = vcmask 64512   ;;  %v513_v12 = vlaneseq }
  0x5b   : > { %745 = vmatprep.subr.mxu0 %v987_v0  ;;  %747 = vmatprep.mubr.msk.f32.mxu0 %vm988_vm0, %v987_v0  ;;  %v269_v2 = vld [vmem:[#allocation7] sm:$0xff]  ;;  %s989_s27 = smov 126   ;;  %s990_s14 = smov 127   ;;  %v270_v3 = vld [vmem:[%s223_s7 + $0x8] sm:$0xff]  ;;  %vm435_vm2 = vcmask 1031168   ;;  %vm279_vm3 = vcmask 1039360  }
  0x5c   : > { %740 = vmatprep.subr.mxu1 %v987_v0  ;;  %742 = vmatprep.mubr.msk.f32.mxu1 %vm988_vm0, %v987_v0  ;;  %v272_v8 = vld [vmem:[#allocation7 + $0x8] sm:$0xff]  ;;  %v430_v9 = vld [vmem:[#allocation7 + $0x10] sm:$0xff]  ;;  %vm524_vm4 = vcmask 7168   ;;  %v514_v13 = vand.u32 127, %v513_v12  ;;  %s723_s23 = sshll.u32 %s1166_s6, 3  ;;  %s730_s21 = sshll.u32 %s973_s18, 7 }
  0x5d   : > { %431 = vrot.lane.b32.xlu1 %v268_v1, %s989_s27  ;;  %275 = vrot.lane.b32.xlu0 %v268_v1, %s990_s14  ;;  %525 = vst.msk [vmem:[#allocation2] sm:$0xff] %vm524_vm4, %v987_v0  ;;  %526 = vst.msk [vmem:[#allocation3] sm:$0xff] %vm524_vm4, %v987_v0  ;;  %s247_s25 = scalar_lea.vmem [#allocation9], %s723_s23  ;;  %s1188_s29 = scalar_lea.hbm %s1245_s2, %s730_s21 }
  0x5e   : > { %746 = vmatpush3.msra.mxu0 %v268_v1  ;;  %vm518_vm5 = vcmp.lt.s32.totalorder %v514_v13, 16  ;;  %s566_s22 = sshll.u32 %s247_s25, 4  ;;  %s544_s13 = scalar_lea.sflag [#allocation6], %s1166_s6  ;;  %s567_s22 = int_to_ptr.vmem [resolvable:$true] %s566_s22 }
  0x5f   : > { %748 = vmatmul.mubr.msk.f32.vlgmr.msra.gmra.mrb[0].mxu0 %vm282_vm1, %v269_v2  ;;  %750 = vmatprep.subr.mxu0 %v987_v0  ;;  %s895_s24 = scalar_lea.vmem %s567_s22, 128  ;;  %s991_s30 = smov [#allocation9]  }
  0x60   : > { %752 = vmatprep.mubr.msk.f32.mxu0 %vm988_vm0, %v987_v0  ;;  %p896_p13 = scmp.ne.s32.totalorder %s567_s22, %s895_s24  ;;  %s899_s9 = sshll.u32 %s991_s30, 4  ;;  %s900_s9 = int_to_ptr.vmem [resolvable:$false] %s899_s9 }
  0x61   : > { %433 = vrot.lane.b32.xlu1 %v270_v3, %s989_s27  ;;  %277 = vrot.lane.b32.xlu0 %v270_v3, %s990_s14  ;;  %s901_s11 = scalar_lea.vmem %s900_s9, 256  ;;  %p902_p12 = scmp.lt.s32.totalorder %s567_s22, %s900_s9 }
  0x62   : > { %p897_p6 = pnand %p896_p13, %p1113_p10  ;;  %p903_p11 = scmp.lt.s32.totalorder %s901_s11, %s895_s24 }
  0x64   : > { %p898_p8 = pneg %p897_p6  ;;  %p904_p0 = por %p903_p11, %p902_p12 }
  0x66   : > { %p905_p5 = pnand %p904_p0, %p898_p8 }
  0xcf   : > { %v432_v4 = vpop.permute.xlu1 %431  ;;  %v276_v5 = vpop.permute.xlu0 %275 }
  0xd3   : > { %v434_v6 = vpop.permute.xlu1 %433  ;;  %v278_v7 = vpop.permute.xlu0 %277 }
  0xd4   : > { %v436_v10 = vsel %vm435_vm2, %v432_v4, %v434_v6  ;;  %v280_v11 = vsel %vm279_vm3, %v276_v5, %v278_v7 }
  0xd5   : > { %741 = vmatpush3.msra.mxu1 %v280_v11  ;;  %751 = vmatpush3.msra.mxu0 %v436_v10 }
  0xd6   : > { %743 = vmatmul.mubr.msk.f32.vlgmr.msra.gmra.mrb[0].mxu1 %vm282_vm1, %v272_v8  ;;  %753 = vmatmul.mubr.msk.f32.vlgmr.msra.gmra.mrb[0].mxu0 %vm282_vm1, %v430_v9 }
 0x1a9   : > { %v352_v14 = vpop.f32.mrb[0].mxu1  ;;  %v507_v15 = vpop.f32.mrb[0].mxu0 }
 0x1aa   : > { %v755_v16 = vadd.f32 %v507_v15, %v352_v14  ;;  %v754_v17 = vpop.f32.mrb[1].mxu0  ;;  %v744_v18 = vpop.f32.mrb[1].mxu1 }
 0x1ac   : > { %512 = vst [vmem:[%s247_s25] sm:$0xff] %v755_v16  ;;  %v519_v19 = vsel %vm518_vm5, %v755_v16, 0.0 }
 0x1ad   : > { %528 = vadd.xlane.f32.xlu0 %v519_v19  ;;  %v534_v20 = vmul.f32 %v519_v19, %v519_v19 }
 0x1af   : > { %535 = vadd.xlane.f32.xlu1 %v534_v20 }
 0x1b0   : > { %908 = shalt.err (!%p905_p5)
}
 0x1b1   : > { %s909_s6 = scalar_lea.hbm %s1188_s29, 128  ;;  %s913_s14 = scalar_lea.hbm %s1245_s2, 256 }
 0x1b2   : > { %p910_p9 = scmp.ne.s32.totalorder %s1188_s29, %s909_s6  ;;  %p914_p7 = scmp.lt.u32.totalorder %s1188_s29, %s1245_s2 }
 0x1b3   : > { %p915_p3 = scmp.lt.u32.totalorder %s913_s14, %s909_s6  ;;  %p917_p13 = scmp.lt.u32.totalorder %s909_s6, %s1188_s29 }
 0x1b4   : > { %p911_p1 = pnand %p910_p9, %p1113_p10 }
 0x1b5   : > { %p916_p4 = por %p915_p3, %p914_p7 }
 0x1b6   : > { %p912_p2 = pneg %p911_p1 }
 0x1b7   : > { %p918_p6 = por %p917_p13, %p916_p4 }
 0x1b9   : > { %p919_p8 = pnand %p918_p6, %p912_p2 }
 0x1bb   : > { %922 = shalt.err (!%p919_p8)
}
 0x1bc   : > { %764 = dma.vmem_to_hbm [thread:$0]  (%p1113_p10), %s567_s22, 128, %s1188_s29, %s544_s13   ;;  %v527_v21 = vld [vmem:[#allocation2] sm:$0xff]  ;;  %v533_v23 = vld [vmem:[#allocation3] sm:$0xff] }
 0x1bd   : > { %p260_p12 = scmp.lt.s32.totalorder %s973_s18, 1 }
 0x1bf   : > { %s1275_s18 = smov (!%p260_p12, %s973_s18), 1 }
 0x1c0   : > { %s724_s21 = sshll.u32 %s1275_s18, 3 }
 0x1c1   : > { %s263_s8 = scalar_lea.vmem %s1246_s3, %s724_s21  ;;  %s267_s22 = scalar_lea.vmem %s1247_s4, %s724_s21 }
 0x23a   : > { %v529_v22 = vpop.xlane.xlu0 %528 }
 0x23b   : > { %v530_v24 = vadd.f32 %v529_v22, %v527_v21 }
 0x23c   : > { %v536_v25 = vpop.xlane.xlu1 %535 }
 0x23d   : > { %532 = vst.msk [vmem:[#allocation2] sm:$0xff] %vm524_vm4, %v530_v24  ;;  %v537_v26 = vadd.f32 %v536_v25, %v533_v23 }
 0x23f   : > { %538 = vst.msk [vmem:[#allocation3] sm:$0xff] %vm524_vm4, %v537_v26 }
 0x244   : > { %v539_v27 = vld [vmem:[#allocation2] sm:$0xff] }
 0x245   : > { %540 = vst.msk [vmem:[%s263_s8] sm:$0xff] %vm524_vm4, %v539_v27 }
 0x246   : > { %v541_v28 = vld [vmem:[#allocation3] sm:$0xff] }
 0x247   : > { %542 = vst.msk [vmem:[%s267_s22] sm:$0xff] %vm524_vm4, %v541_v28 }
 0x248 PF: > { %s584_s18 = sand.u32 1, %s961_s15   ;;  %p1265_p10 = scmp.ne.s32.totalorder %s1255_s26, 0 }
 0x249   : > { %p1266_p11 = scmp.ge.s32.totalorder %s981_s20, 2  ;;  %s585_s29 = scalar_lea.sflag [#allocation6], %s584_s18 }
 0x24b   : > { %p775_p0 = pnand %p1266_p11, %p1265_p10 }
 0x24d   : > { %956 = dma.done.wait (!%p775_p0), %s585_s29, 128  }
 0x24e   : > { %958 = vsyncadd (!%p775_p0), %s585_s29, 4294967168  ;;  %s22_s20 = sadd.s32 1, %s981_s20   ;;  %s1267_s15 = smov %s965_s16 }
 0x24f   : > { %p19_p5 = scmp.ge.s32.totalorder %s22_s20, 4   ;;  %s1268_s16 = smov %s969_s17 }
 0x250   : > { %s1269_s17 = smov %s1122_s10  ;;  %s1270_s18 = smov %s977_s19 }
 0x251   : > { %s1271_s19 = smov %s1273_s5  ;;  %21 = sbr.rel (!%p19_p5) target bundleno = 7 (0x7), region = 107 }
 0x258   :  { %604 = vsyncpa [#allocation5], 1 }
 0x259   :  { %606 = vsyncpa [#allocation5 + $0x1], 1 }
 0x25a   :  { %607 = vsyncpa [#allocation8], 1 }
 0x25b   :  { %608 = vsyncpa [#allocation6], 1 }
 0x25c   :  { %610 = vsyncpa [#allocation6 + $0x1], 1 }

</bundles_post_ra>
